<compile_context>
chip_gen: v7x
topology: tpu7x:2x2x1
jax: 0.10.0
libtpu: 0.0.40
codegen_flags: <defaults>
</compile_context>

<pallas_src>
import functools

import jax
import jax.numpy as jnp
from jax.experimental import pallas as pl
from jax.experimental.pallas import tpu as pltpu

# --- logical (PyTorch) dims --------------------------------------------------
STATE_DIM = 16
H1, H2, H3 = 400, 300, 200
N_ACTIONS = 4            # args.n_actions in the original script (chosen here)
BN_EPS = 1e-5
LEAKY_SLOPE = 0.01

# --- lane-padded dims (multiples of 128 on the feature/lane axis) ------------
H1P, H2P, H3P = 512, 384, 256
N_OUT_P = 128

# static, 128-aligned offsets into the packed (1, VEC_LEN) parameter row:
#   [ b1 (512) | b2 (384) | gamma (384) | beta (384) | b3 (256) | b4 (128) ]
_OFF_B1 = 0
_OFF_B2 = _OFF_B1 + H1P
_OFF_G = _OFF_B2 + H2P
_OFF_BE = _OFF_G + H2P
_OFF_B3 = _OFF_BE + H2P
_OFF_B4 = _OFF_B3 + H3P
VEC_LEN = _OFF_B4 + N_OUT_P          # 2048

BATCH_TILE = 256                      # default rows per grid step
VMEM_LIMIT = 32 * 1024 * 1024         # explicit scoped-VMEM limit (safe v5e/v6e/v7x)


def _pick_act_dtype():
    """bf16 elementwise on chips with a bf16 VPU (v6e/v7x); f32 on v5e."""
    try:
        kind = jax.devices()[0].device_kind.lower()
    except Exception:
        return jnp.bfloat16
    if "v5 lite" in kind or "v5lite" in kind or "v5e" in kind:
        return jnp.float32
    return jnp.bfloat16


ACT_DTYPE = _pick_act_dtype()


def _round_up(n, m):
    return (n + m - 1) // m * m


def _leaky(v):
    # max-form leaky_relu: mul + max (2 VPU ops) instead of cmp + mul + select.
    return jnp.maximum(v, LEAKY_SLOPE * v)


def _mxu(a, w_bf16):
    # bf16 x bf16 operands, f32 accumulation on the MXU.
    return jnp.dot(a.astype(jnp.bfloat16), w_bf16,
                   preferred_element_type=jnp.float32)


def _masked_moments(q2, tile, row0, batch, mask_needed):
    """f32 per-feature sum / sum-of-squares, masking padded batch rows."""
    q2f = q2.astype(jnp.float32)
    if mask_needed:  # static python bool
        row = jax.lax.broadcasted_iota(jnp.int32, (tile, 1), 0) + row0
        q2f = q2f * (row < batch).astype(jnp.float32)
    s = jnp.sum(q2f, axis=0, keepdims=True)
    ss = jnp.sum(q2f * q2f, axis=0, keepdims=True)
    return s, ss


def _bn_scale_shift(s, ss, gamma, beta, batch):
    """Folded BN affine (f32): scale = gamma*rsqrt(var+eps), shift = beta - mean*scale."""
    inv_n = 1.0 / batch
    mean = s * inv_n
    # one-pass biased variance, clamped at 0 (cancellation-safe enough in f32).
    var = jnp.maximum(ss * inv_n - mean * mean, 0.0)
    scale = gamma * jax.lax.rsqrt(var + BN_EPS)
    shift = beta - mean * scale
    return scale, shift


# ------------------------------- kernels -------------------------------------
def _qvalue_fused_kernel(x_ref, w1_ref, w2_ref, w3_ref, w4_ref, vec_ref, out_ref,
                         *, batch, tile, mask_needed, act_dtype):
    """Single-tile path: whole (padded) batch resident, one launch."""
    b1 = vec_ref[:, _OFF_B1:_OFF_B1 + H1P].astype(act_dtype)
    b2 = vec_ref[:, _OFF_B2:_OFF_B2 + H2P].astype(act_dtype)
    gamma = vec_ref[:, _OFF_G:_OFF_G + H2P]
    beta = vec_ref[:, _OFF_BE:_OFF_BE + H2P]
    b3 = vec_ref[:, _OFF_B3:_OFF_B3 + H3P].astype(act_dtype)
    b4 = vec_ref[:, _OFF_B4:_OFF_B4 + N_OUT_P]

    a1 = _leaky(_mxu(x_ref[...], w1_ref[...]).astype(act_dtype) + b1)   # (T, 512)
    q2 = _leaky(_mxu(a1, w2_ref[...]).astype(act_dtype) + b2)           # (T, 384)

    s, ss = _masked_moments(q2, tile, 0, batch, mask_needed)
    scale, shift = _bn_scale_shift(s, ss, gamma, beta, batch)
    qbn = q2 * scale.astype(act_dtype) + shift.astype(act_dtype)        # 2 ops/elem

    a3 = _leaky(_mxu(qbn, w3_ref[...]).astype(act_dtype) + b3)          # (T, 256)
    out_ref[...] = (_mxu(a3, w4_ref[...]) + b4).astype(out_ref.dtype)   # (T, 128)


def _qvalue_pass1_kernel(x_ref, w1_ref, w2_ref, vec_ref, q2_ref, stats_ref,
                         *, batch, tile, mask_needed, act_dtype):
    """Pass 1: l1 + l2 per batch tile; emit pre-BN activations + accumulate stats."""
    i = pl.program_id(0)
    b1 = vec_ref[:, _OFF_B1:_OFF_B1 + H1P].astype(act_dtype)
    b2 = vec_ref[:, _OFF_B2:_OFF_B2 + H2P].astype(act_dtype)

    a1 = _leaky(_mxu(x_ref[...], w1_ref[...]).astype(act_dtype) + b1)
    q2 = _leaky(_mxu(a1, w2_ref[...]).astype(act_dtype) + b2)
    q2_ref[...] = q2

    s, ss = _masked_moments(q2, tile, i * tile, batch, mask_needed)

    @pl.when(i == 0)
    def _():
        stats_ref[...] = jnp.zeros_like(stats_ref)

    stats_ref[0:1, :] = stats_ref[0:1, :] + s       # sum
    stats_ref[1:2, :] = stats_ref[1:2, :] + ss      # sum of squares


def _qvalue_pass2_kernel(q2_ref, stats_ref, w3_ref, w4_ref, vec_ref, out_ref,
                         *, batch, act_dtype):
    """Pass 2: folded BN-apply + l3 + l4 per batch tile."""
    gamma = vec_ref[:, _OFF_G:_OFF_G + H2P]
    beta = vec_ref[:, _OFF_BE:_OFF_BE + H2P]
    b3 = vec_ref[:, _OFF_B3:_OFF_B3 + H3P].astype(act_dtype)
    b4 = vec_ref[:, _OFF_B4:_OFF_B4 + N_OUT_P]

    scale, shift = _bn_scale_shift(stats_ref[0:1, :], stats_ref[1:2, :],
                                   gamma, beta, batch)
    qbn = q2_ref[...] * scale.astype(act_dtype) + shift.astype(act_dtype)
    a3 = _leaky(_mxu(qbn, w3_ref[...]).astype(act_dtype) + b3)
    out_ref[...] = (_mxu(a3, w4_ref[...]) + b4).astype(out_ref.dtype)


# ------------------------------- wrapper --------------------------------------
@functools.partial(jax.jit, static_argnames=("batch_tile",))
def q_value_forward(x, params, batch_tile=BATCH_TILE):
    """Q_Value forward.  x: (batch, 16) f32 -> (batch, N_ACTIONS) f32.

    Batch contract: feed >=256 rows per call (>=128 on v5e) to approach MXU
    roofline; rows are padded to a multiple of 16 (8 for f32 activations) and
    BatchNorm statistics are masked to the true batch.  batch == 1 is not
    meaningful for train-mode BN (PyTorch raises; here var ~= 0).
    """
    w1, w2, w3, w4, vec = params
    batch = x.shape[0]
    act_dtype = ACT_DTYPE
    row_align = 16 if act_dtype == jnp.bfloat16 else 8

    tile = _round_up(min(batch_tile, _round_up(batch, row_align)), row_align)
    padded = _round_up(batch, tile)
    grid = padded // tile
    mask_needed = padded != batch
    if padded != batch:
        x = jnp.pad(x, ((0, padded - batch), (0, 0)))

    vmem = pl.BlockSpec(memory_space=pltpu.MemorySpace.VMEM)

    if grid == 1:
        kernel = functools.partial(_qvalue_fused_kernel, batch=batch, tile=tile,
                                   mask_needed=mask_needed, act_dtype=act_dtype)
        out = pl.pallas_call(
            kernel,
            out_shape=jax.ShapeDtypeStruct((padded, N_OUT_P), jnp.float32),
            in_specs=[vmem] * 6,
            out_specs=vmem,
            compiler_params=pltpu.CompilerParams(vmem_limit_bytes=VMEM_LIMIT),
        )(x, w1, w2, w3, w4, vec)
        return out[:batch, :N_ACTIONS]

    # ---- pass 1: l1+l2, pre-BN q -> HBM, stats accumulated ("arbitrary") ----
    p1 = functools.partial(_qvalue_pass1_kernel, batch=batch, tile=tile,
                           mask_needed=mask_needed, act_dtype=act_dtype)
    q2, stats = pl.pallas_call(
        p1,
        out_shape=(jax.ShapeDtypeStruct((padded, H2P), act_dtype),
                   jax.ShapeDtypeStruct((8, H2P), jnp.float32)),
        grid=(grid,),
        in_specs=[pl.BlockSpec((tile, STATE_DIM), lambda i: (i, 0)),
                  pl.BlockSpec((STATE_DIM, H1P), lambda i: (0, 0)),   # resident
                  pl.BlockSpec((H1P, H2P), lambda i: (0, 0)),         # resident
                  pl.BlockSpec((1, VEC_LEN), lambda i: (0, 0))],      # resident
        out_specs=(pl.BlockSpec((tile, H2P), lambda i: (i, 0)),
                   pl.BlockSpec((8, H2P), lambda i: (0, 0))),         # accumulator
        compiler_params=pltpu.CompilerParams(
            dimension_semantics=("arbitrary",),
            vmem_limit_bytes=VMEM_LIMIT),
    )(x, w1, w2, vec)

    # ---- pass 2: BN-apply + l3 + l4, batch tiles independent ("parallel") ----
    p2 = functools.partial(_qvalue_pass2_kernel, batch=batch, act_dtype=act_dtype)
    out = pl.pallas_call(
        p2,
        out_shape=jax.ShapeDtypeStruct((padded, N_OUT_P), jnp.float32),
        grid=(grid,),
        in_specs=[pl.BlockSpec((tile, H2P), lambda i: (i, 0)),
                  pl.BlockSpec((8, H2P), lambda i: (0, 0)),
                  pl.BlockSpec((H2P, H3P), lambda i: (0, 0)),         # resident
                  pl.BlockSpec((H3P, N_OUT_P), lambda i: (0, 0)),     # resident
                  pl.BlockSpec((1, VEC_LEN), lambda i: (0, 0))],      # resident
        out_specs=pl.BlockSpec((tile, N_OUT_P), lambda i: (i, 0)),
        compiler_params=pltpu.CompilerParams(
            dimension_semantics=("parallel",),
            vmem_limit_bytes=VMEM_LIMIT),
    )(q2, stats, w3, w4, vec)
    return out[:batch, :N_ACTIONS]


# --------------------------- parameter construction ---------------------------
def _xavier_normal(key, fan_in, fan_out):
    # nn.init.xavier_normal_: std = gain * sqrt(2 / (fan_in + fan_out)), gain=1
    std = (2.0 / (fan_in + fan_out)) ** 0.5
    return jax.random.normal(key, (fan_in, fan_out), dtype=jnp.float32) * std


def _pad_to(a, shape):
    pads = [(0, t - s) for s, t in zip(a.shape, shape)]
    return jnp.pad(a, pads)


def init_params(key):
    k1, k2, k3, k4, kb1, kb2, kb3, kb4 = jax.random.split(key, 8)
    # weights: (in, out) layout, zero-padded to lane multiples, stored in bf16
    w1 = _pad_to(_xavier_normal(k1, STATE_DIM, H1), (STATE_DIM, H1P))
    w2 = _pad_to(_xavier_normal(k2, H1, H2), (H1P, H2P))
    w3 = _pad_to(_xavier_normal(k3, H2, H3), (H2P, H3P))
    w4 = _pad_to(_xavier_normal(k4, H3, N_ACTIONS), (H3P, N_OUT_P))
    w1, w2, w3, w4 = (w.astype(jnp.bfloat16) for w in (w1, w2, w3, w4))

    # small random biases (exercise bias paths); BN gamma=1, beta=0 as in the
    # module's __init__.  Padded lanes are exactly zero.
    b1 = _pad_to(0.05 * jax.random.normal(kb1, (H1,), jnp.float32), (H1P,))
    b2 = _pad_to(0.05 * jax.random.normal(kb2, (H2,), jnp.float32), (H2P,))
    gamma = _pad_to(jnp.ones((H2,), jnp.float32), (H2P,))
    beta = jnp.zeros((H2P,), jnp.float32)
    b3 = _pad_to(0.05 * jax.random.normal(kb3, (H3,), jnp.float32), (H3P,))
    b4 = _pad_to(0.05 * jax.random.normal(kb4, (N_ACTIONS,), jnp.float32),
                 (N_OUT_P,))

    vec = jnp.concatenate([b1, b2, gamma, beta, b3, b4]).reshape(1, VEC_LEN)
    assert vec.shape == (1, VEC_LEN)
    return (w1, w2, w3, w4, vec)


# ------------------------------ pure-JAX reference ----------------------------
def reference_forward(x, params):
    """Numerics-mirroring reference at the *unpadded* logical dims.

    Mirrors the kernel's dtype strategy (bf16 MXU inputs w/ f32 accumulation,
    activations in ACT_DTYPE, BN stats + folded scale/shift in f32) so that
    padding / tiling / masking / two-pass-stat bugs show up against a tight
    tolerance.
    """
    act = ACT_DTYPE
    w1, w2, w3, w4, vec = params
    v = vec[0]
    b1 = v[_OFF_B1:_OFF_B1 + H1].astype(act)
    b2 = v[_OFF_B2:_OFF_B2 + H2].astype(act)
    gamma = v[_OFF_G:_OFF_G + H2]
    beta = v[_OFF_BE:_OFF_BE + H2]
    b3 = v[_OFF_B3:_OFF_B3 + H3].astype(act)
    b4 = v[_OFF_B4:_OFF_B4 + N_ACTIONS]

    a1 = _leaky(_mxu(x, w1[:, :H1]).astype(act) + b1)
    q2 = _leaky(_mxu(a1, w2[:H1, :H2]).astype(act) + b2)

    q2f = q2.astype(jnp.float32)
    mean = jnp.mean(q2f, axis=0, keepdims=True)
    var = jnp.maximum(jnp.mean(q2f * q2f, axis=0, keepdims=True) - mean * mean, 0.0)
    scale = gamma * jax.lax.rsqrt(var + BN_EPS)
    shift = beta - mean * scale
    qbn = q2 * scale.astype(act) + shift.astype(act)

    a3 = _leaky(_mxu(qbn, w3[:H2, :H3]).astype(act) + b3)
    return _mxu(a3, w4[:H3, :N_ACTIONS]) + b4


if __name__ == "__main__":
    key = jax.random.PRNGKey(0)
    k_params, k_x1, k_x2 = jax.random.split(key, 3)
    params = init_params(k_params)

    # (a) small batch -> fused single-tile path (grid == 1, no masking).
    batch_a = 16
    x_a = jax.random.normal(k_x1, (batch_a, STATE_DIM), dtype=jnp.float32)
    out_a = jax.block_until_ready(q_value_forward(x_a, params))
    ref_a = reference_forward(x_a, params)
    assert out_a.shape == (batch_a, N_ACTIONS)
    assert jnp.allclose(out_a, ref_a, atol=2e-3, rtol=2e-3), "fused path mismatch"

    # (b) batch not a tile multiple -> two-pass tiled path
    #     (small batch_tile forces grid == 3 + masked BN statistics).
    batch_b = 40
    x_b = jax.random.normal(k_x2, (batch_b, STATE_DIM), dtype=jnp.float32)
    out_b = jax.block_until_ready(q_value_forward(x_b, params, batch_tile=16))
    ref_b = reference_forward(x_b, params)
    assert out_b.shape == (batch_b, N_ACTIONS)
    assert jnp.allclose(out_b, ref_b, atol=2e-3, rtol=2e-3), "tiled path mismatch"

    print("KERNEL_OK")
</pallas_src>

<mosaic_0001>
module attributes {stable_mosaic.version = 11 : i64} {
  func.func @_qvalue_fused_kernel(%arg0: memref<16x16xf32, #tpu.memory_space<vmem>>, %arg1: memref<16x512xbf16, #tpu.memory_space<vmem>>, %arg2: memref<512x384xbf16, #tpu.memory_space<vmem>>, %arg3: memref<384x256xbf16, #tpu.memory_space<vmem>>, %arg4: memref<256x128xbf16, #tpu.memory_space<vmem>>, %arg5: memref<1x2048xf32, #tpu.memory_space<vmem>>, %arg6: memref<16x128xf32, #tpu.memory_space<vmem>>) attributes {dimension_semantics = [], scalar_prefetch = 0 : i64, scratch_operands = 0 : i64, tpu.core_type = #tpu.core_type<tc>} {
    %c0 = arith.constant 0 : index
    %c0_0 = arith.constant 0 : index
    %0 = vector.load %arg5[%c0, %c0_0] : memref<1x2048xf32, #tpu.memory_space<vmem>>, vector<1x512xf32>
    %1 = arith.truncf %0 : vector<1x512xf32> to vector<1x512xbf16>
    %c0_1 = arith.constant 0 : index
    %c512 = arith.constant 512 : index
    %2 = vector.load %arg5[%c0_1, %c512] : memref<1x2048xf32, #tpu.memory_space<vmem>>, vector<1x384xf32>
    %3 = arith.truncf %2 : vector<1x384xf32> to vector<1x384xbf16>
    %c0_2 = arith.constant 0 : index
    %c896 = arith.constant 896 : index
    %4 = vector.load %arg5[%c0_2, %c896] : memref<1x2048xf32, #tpu.memory_space<vmem>>, vector<1x384xf32>
    %c0_3 = arith.constant 0 : index
    %c1280 = arith.constant 1280 : index
    %5 = vector.load %arg5[%c0_3, %c1280] : memref<1x2048xf32, #tpu.memory_space<vmem>>, vector<1x384xf32>
    %c0_4 = arith.constant 0 : index
    %c1664 = arith.constant 1664 : index
    %6 = vector.load %arg5[%c0_4, %c1664] : memref<1x2048xf32, #tpu.memory_space<vmem>>, vector<1x256xf32>
    %7 = arith.truncf %6 : vector<1x256xf32> to vector<1x256xbf16>
    %c0_5 = arith.constant 0 : index
    %c1920 = arith.constant 1920 : index
    %8 = vector.load %arg5[%c0_5, %c1920] : memref<1x2048xf32, #tpu.memory_space<vmem>>, vector<1x128xf32>
    %c0_6 = arith.constant 0 : index
    %c0_7 = arith.constant 0 : index
    %9 = vector.load %arg0[%c0_6, %c0_7] : memref<16x16xf32, #tpu.memory_space<vmem>>, vector<16x16xf32>
    %c0_8 = arith.constant 0 : index
    %c0_9 = arith.constant 0 : index
    %10 = vector.load %arg1[%c0_8, %c0_9] : memref<16x512xbf16, #tpu.memory_space<vmem>>, vector<16x512xbf16>
    %11 = arith.truncf %9 : vector<16x16xf32> to vector<16x16xbf16>
    %cst = arith.constant dense<0.000000e+00> : vector<16x512xf32>
    %12 = tpu.matmul %11, %10, %cst {dimension_numbers = #tpu.dot_dimension_numbers<[1], [0], [0], [1], [0, 0, 1, 1], [], []>} : vector<16x16xbf16>, vector<16x512xbf16>, vector<16x512xf32> -> vector<16x512xf32>
    %13 = arith.truncf %12 : vector<16x512xf32> to vector<16x512xbf16>
    %14 = vector.broadcast %1 : vector<1x512xbf16> to vector<16x512xbf16>
    %15 = arith.addf %13, %14 : vector<16x512xbf16>
    %cst_10 = arith.constant 1.000980e-02 : bf16
    %16 = vector.broadcast %cst_10 : bf16 to vector<16x512xbf16>
    %17 = arith.mulf %16, %15 : vector<16x512xbf16>
    %18 = arith.maximumf %15, %17 : vector<16x512xbf16>
    %c0_11 = arith.constant 0 : index
    %c0_12 = arith.constant 0 : index
    %19 = vector.load %arg2[%c0_11, %c0_12] : memref<512x384xbf16, #tpu.memory_space<vmem>>, vector<512x384xbf16>
    %cst_13 = arith.constant dense<0.000000e+00> : vector<16x384xf32>
    %20 = tpu.matmul %18, %19, %cst_13 {dimension_numbers = #tpu.dot_dimension_numbers<[1], [0], [0], [1], [0, 0, 1, 1], [], []>} : vector<16x512xbf16>, vector<512x384xbf16>, vector<16x384xf32> -> vector<16x384xf32>
    %21 = arith.truncf %20 : vector<16x384xf32> to vector<16x384xbf16>
    %22 = vector.broadcast %3 : vector<1x384xbf16> to vector<16x384xbf16>
    %23 = arith.addf %21, %22 : vector<16x384xbf16>
    %cst_14 = arith.constant 1.000980e-02 : bf16
    %24 = vector.broadcast %cst_14 : bf16 to vector<16x384xbf16>
    %25 = arith.mulf %24, %23 : vector<16x384xbf16>
    %26 = arith.maximumf %23, %25 : vector<16x384xbf16>
    %27 = arith.extf %26 : vector<16x384xbf16> to vector<16x384xf32>
    %cst_15 = arith.constant dense<0.000000e+00> : vector<384xf32>
    %28 = vector.multi_reduction <add>, %27, %cst_15 [0] : vector<16x384xf32> to vector<384xf32>
    %29 = vector.shape_cast %28 : vector<384xf32> to vector<1x384xf32>
    %30 = arith.mulf %27, %27 : vector<16x384xf32>
    %cst_16 = arith.constant dense<0.000000e+00> : vector<384xf32>
    %31 = vector.multi_reduction <add>, %30, %cst_16 [0] : vector<16x384xf32> to vector<384xf32>
    %32 = vector.shape_cast %31 : vector<384xf32> to vector<1x384xf32>
    %cst_17 = arith.constant 6.250000e-02 : f32
    %33 = vector.broadcast %cst_17 : f32 to vector<1x384xf32>
    %34 = arith.mulf %29, %33 : vector<1x384xf32>
    %cst_18 = arith.constant 6.250000e-02 : f32
    %35 = vector.broadcast %cst_18 : f32 to vector<1x384xf32>
    %36 = arith.mulf %32, %35 : vector<1x384xf32>
    %37 = arith.mulf %34, %34 : vector<1x384xf32>
    %38 = arith.subf %36, %37 : vector<1x384xf32>
    %cst_19 = arith.constant 0.000000e+00 : f32
    %39 = vector.broadcast %cst_19 : f32 to vector<1x384xf32>
    %40 = arith.maximumf %38, %39 : vector<1x384xf32>
    %cst_20 = arith.constant 9.99999974E-6 : f32
    %41 = vector.broadcast %cst_20 : f32 to vector<1x384xf32>
    %42 = arith.addf %40, %41 : vector<1x384xf32>
    %43 = math.rsqrt %42 : vector<1x384xf32>
    %44 = arith.mulf %4, %43 : vector<1x384xf32>
    %45 = arith.mulf %34, %44 : vector<1x384xf32>
    %46 = arith.subf %5, %45 : vector<1x384xf32>
    %47 = arith.truncf %44 : vector<1x384xf32> to vector<1x384xbf16>
    %48 = vector.broadcast %47 : vector<1x384xbf16> to vector<16x384xbf16>
    %49 = arith.mulf %26, %48 : vector<16x384xbf16>
    %50 = arith.truncf %46 : vector<1x384xf32> to vector<1x384xbf16>
    %51 = vector.broadcast %50 : vector<1x384xbf16> to vector<16x384xbf16>
    %52 = arith.addf %49, %51 : vector<16x384xbf16>
    %c0_21 = arith.constant 0 : index
    %c0_22 = arith.constant 0 : index
    %53 = vector.load %arg3[%c0_21, %c0_22] : memref<384x256xbf16, #tpu.memory_space<vmem>>, vector<384x256xbf16>
    %cst_23 = arith.constant dense<0.000000e+00> : vector<16x256xf32>
    %54 = tpu.matmul %52, %53, %cst_23 {dimension_numbers = #tpu.dot_dimension_numbers<[1], [0], [0], [1], [0, 0, 1, 1], [], []>} : vector<16x384xbf16>, vector<384x256xbf16>, vector<16x256xf32> -> vector<16x256xf32>
    %55 = arith.truncf %54 : vector<16x256xf32> to vector<16x256xbf16>
    %56 = vector.broadcast %7 : vector<1x256xbf16> to vector<16x256xbf16>
    %57 = arith.addf %55, %56 : vector<16x256xbf16>
    %cst_24 = arith.constant 1.000980e-02 : bf16
    %58 = vector.broadcast %cst_24 : bf16 to vector<16x256xbf16>
    %59 = arith.mulf %58, %57 : vector<16x256xbf16>
    %60 = arith.maximumf %57, %59 : vector<16x256xbf16>
    %c0_25 = arith.constant 0 : index
    %c0_26 = arith.constant 0 : index
    %61 = vector.load %arg4[%c0_25, %c0_26] : memref<256x128xbf16, #tpu.memory_space<vmem>>, vector<256x128xbf16>
    %cst_27 = arith.constant dense<0.000000e+00> : vector<16x128xf32>
    %62 = tpu.matmul %60, %61, %cst_27 {dimension_numbers = #tpu.dot_dimension_numbers<[1], [0], [0], [1], [0, 0, 1, 1], [], []>} : vector<16x256xbf16>, vector<256x128xbf16>, vector<16x128xf32> -> vector<16x128xf32>
    %63 = vector.broadcast %8 : vector<1x128xf32> to vector<16x128xf32>
    %64 = arith.addf %62, %63 : vector<16x128xf32>
    %c0_28 = arith.constant 0 : index
    %c0_29 = arith.constant 0 : index
    %65 = vector.load %arg6[%c0_28, %c0_29] : memref<16x128xf32, #tpu.memory_space<vmem>>, vector<16x128xf32>
    tpu.vector_store %arg6[%c0_28, %c0_29], %64 {strides = array<i32>} : memref<16x128xf32, #tpu.memory_space<vmem>>, vector<16x128xf32>,
    return
  }
}

</mosaic_0001>

<bundles_post_ra>
// kernel: q_value_forward.1
= control target key start
LH: loop header
LB: loop body
LE: loop exit
PB: predicated region body
PF: predicated region fallthrough
CT: control target
= control target key end

     0   :  { %11 = vsyncpa [#allocation3], 0  ;;  %s2766_s0 = inlined_call_operand.hbm [shape: f32[16,16], index: 0, kind: input, shape index: {}]   ;;  %s2767_s1 = inlined_call_operand.hbm [shape: bf16[16,512], index: 1, kind: input, shape index: {}]   ;;  %s2768_s2 = inlined_call_operand.hbm [shape: bf16[512,384], index: 2, kind: input, shape index: {}]   ;;  %s2769_s3 = inlined_call_operand.hbm [shape: bf16[384,256], index: 3, kind: input, shape index: {}]   ;;  %s2770_s4 = inlined_call_operand.hbm [shape: bf16[256,128], index: 4, kind: input, shape index: {}]   ;;  %s2771_s5 = inlined_call_operand.vmem [shape: f32[1,2048], index: 5, kind: input, shape index: {}]   ;;  %s2772_s6 = inlined_call_operand.vmem [shape: f32[16,128], index: 6, kind: output, shape index: {}]  }
   0x1   :  { %12 = vsyncpa [#allocation5], 0 }
   0x2   :  { %13 = vsyncpa [#allocation8], 0  ;;  %s2558_s21 = smov [#allocation4]   ;;  %s2442_s25 = scalar_lea.hbm %s2767_s1, 512 }
   0x3   :  { %s31_s22 = sshll.u32 %s2558_s21, 4  ;;  %p2443_p0 = scmp.ne.s32.totalorder %s2767_s1, %s2442_s25  ;;  %s32_s22 = int_to_ptr.vmem [resolvable:$true] %s31_s22 }
   0x4   :  { %p2446_p1 = scmp.lt.u32.totalorder %s2442_s25, %s2767_s1 }
   0x6   :  { %p2448_p2 = pnand %p2446_p1, %p2443_p0 }
   0x8   :  { %2451 = shalt.err (!%p2448_p2)
}
   0x9   :  { %s2452_s30 = scalar_lea.vmem %s32_s22, 512  ;;  %p2457_p4 = scmp.lt.s32.totalorder %s32_s22, %s32_s22 }
   0xa   :  { %p2453_p3 = scmp.ne.s32.totalorder %s32_s22, %s2452_s30  ;;  %p2458_p5 = scmp.lt.s32.totalorder %s2452_s30, %s2452_s30 }
   0xc   :  { %p2459_p6 = por %p2458_p5, %p2457_p4 }
   0xe   :  { %p2460_p7 = pnand %p2459_p6, %p2453_p3 }
  0x10   :  { %2463 = shalt.err (!%p2460_p7)
}
  0x11   :  { %s2559_s7 = smov 256   ;;  %s2560_s8 = smov 16  }
  0x12   :  { %37 = dma.hbm_to_vmem [thread:$0]  %s2767_s1, 512, %s32_s22, [#allocation5], %s2559_s7, %s2559_s7, %s2560_s8  }
  0x13   :  { %s2561_s11 = smov [#allocation7]   ;;  %s2562_s13 = smov [#allocation2]  }
  0x14   :  { %s55_s12 = sshll.u32 %s2561_s11, 4  ;;  %s19_s14 = sshll.u32 %s2562_s13, 4  ;;  %s56_s12 = int_to_ptr.vmem [resolvable:$true] %s55_s12  ;;  %s20_s14 = int_to_ptr.vmem [resolvable:$true] %s19_s14 }
  0x15   :  { %s2464_s17 = scalar_lea.hbm %s2769_s3, 6144 }
  0x16   :  { %p2465_p8 = scmp.ne.s32.totalorder %s2769_s3, %s2464_s17  ;;  %p2468_p9 = scmp.lt.u32.totalorder %s2464_s17, %s2769_s3 }
  0x18   :  { %p2470_p10 = pnand %p2468_p9, %p2465_p8 }
  0x1a   :  { %2473 = shalt.err (!%p2470_p10)
}
  0x1b   :  { %s2474_s1 = scalar_lea.vmem %s56_s12, 6144  ;;  %p2479_p12 = scmp.lt.s32.totalorder %s56_s12, %s56_s12 }
  0x1c   :  { %p2475_p11 = scmp.ne.s32.totalorder %s56_s12, %s2474_s1  ;;  %p2480_p13 = scmp.lt.s32.totalorder %s2474_s1, %s2474_s1 }
  0x1e   :  { %p2481_p0 = por %p2480_p13, %p2479_p12 }
  0x20   :  { %p2482_p1 = pnand %p2481_p0, %p2475_p11 }
  0x22   :  { %2485 = shalt.err (!%p2482_p1)
}
  0x23   :  { %s2563_s22 = smov 128   ;;  %s2564_s23 = smov 8  }
  0x24   :  { %61 = dma.hbm_to_vmem [thread:$0]  %s2769_s3, 6144, %s56_s12, [#allocation8], %s2563_s22, %s2563_s22, %s2564_s23  }
  0x25   :  { %s2486_s28 = scalar_lea.hbm %s2766_s0, 256 }
  0x26   :  { %p2487_p2 = scmp.ne.s32.totalorder %s2766_s0, %s2486_s28  ;;  %p2490_p3 = scmp.lt.u32.totalorder %s2486_s28, %s2766_s0 }
  0x28   :  { %p2492_p4 = pnand %p2490_p3, %p2487_p2 }
  0x2a   :  { %2495 = shalt.err (!%p2492_p4)
}
  0x2b   :  { %s2496_s9 = scalar_lea.vmem %s20_s14, 256  ;;  %p2501_p6 = scmp.lt.s32.totalorder %s20_s14, %s20_s14 }
  0x2c   :  { %p2497_p5 = scmp.ne.s32.totalorder %s20_s14, %s2496_s9  ;;  %p2502_p7 = scmp.lt.s32.totalorder %s2496_s9, %s2496_s9 }
  0x2e   :  { %p2503_p8 = por %p2502_p7, %p2501_p6 }
  0x30   :  { %p2504_p9 = pnand %p2503_p8, %p2497_p5 }
  0x32   :  { %2507 = shalt.err (!%p2504_p9)
}
  0x33   :  { %25 = dma.hbm_to_vmem [thread:$0]  %s2766_s0, 256, %s20_s14, [#allocation3], %s2563_s22, %s2563_s22, %s2564_s23  }
  0x34   :  { %s2565_s11 = smov [#allocation6]   ;;  %s2508_s16 = scalar_lea.hbm %s2768_s2, 12288 }
  0x35   :  { %s43_s12 = sshll.u32 %s2565_s11, 4  ;;  %p2509_p10 = scmp.ne.s32.totalorder %s2768_s2, %s2508_s16  ;;  %s44_s12 = int_to_ptr.vmem [resolvable:$true] %s43_s12 }
  0x36   :  { %p2512_p11 = scmp.lt.u32.totalorder %s2508_s16, %s2768_s2 }
  0x38   :  { %p2514_p12 = pnand %p2512_p11, %p2509_p10 }
  0x3a   :  { %2517 = shalt.err (!%p2514_p12)
}
  0x3b   :  { %s2518_s21 = scalar_lea.vmem %s44_s12, 12288  ;;  %p2523_p0 = scmp.lt.s32.totalorder %s44_s12, %s44_s12 }
  0x3c   :  { %p2519_p13 = scmp.ne.s32.totalorder %s44_s12, %s2518_s21  ;;  %p2524_p1 = scmp.lt.s32.totalorder %s2518_s21, %s2518_s21 }
  0x3e   :  { %p2525_p2 = por %p2524_p1, %p2523_p0 }
  0x40   :  { %p2526_p3 = pnand %p2525_p2, %p2519_p13 }
  0x42   :  { %2529 = shalt.err (!%p2526_p3)
}
  0x43   :  { %s2566_s0 = smov 192   ;;  %s2567_s14 = smov 12  }
  0x44   :  { %49 = dma.hbm_to_vmem [thread:$0]  %s2768_s2, 12288, %s44_s12, [#allocation5], %s2566_s0, %s2566_s0, %s2567_s14  }
  0x45   :  { %s2568_s23 = smov [#allocation9]   ;;  %s2530_s27 = scalar_lea.hbm %s2770_s4, 2048 }
  0x46   :  { %s67_s24 = sshll.u32 %s2568_s23, 4  ;;  %p2531_p4 = scmp.ne.s32.totalorder %s2770_s4, %s2530_s27  ;;  %s68_s24 = int_to_ptr.vmem [resolvable:$true] %s67_s24 }
  0x47   :  { %p2534_p5 = scmp.lt.u32.totalorder %s2530_s27, %s2770_s4 }
  0x49   :  { %p2536_p6 = pnand %p2534_p5, %p2531_p4 }
  0x4b   :  { %2539 = shalt.err (!%p2536_p6)
}
  0x4c   :  { %s2540_s8 = scalar_lea.vmem %s68_s24, 2048  ;;  %p2545_p8 = scmp.lt.s32.totalorder %s68_s24, %s68_s24 }
  0x4d   :  { %p2541_p7 = scmp.ne.s32.totalorder %s68_s24, %s2540_s8  ;;  %p2546_p9 = scmp.lt.s32.totalorder %s2540_s8, %s2540_s8 }
  0x4f   :  { %p2547_p10 = por %p2546_p9, %p2545_p8 }
  0x51   :  { %p2548_p11 = pnand %p2547_p10, %p2541_p7 }
  0x53   :  { %2551 = shalt.err (!%p2548_p11)
}
  0x54   :  { %s2569_s2 = smov 64   ;;  %s2570_s9 = smov 4  }
  0x55   :  { %73 = dma.hbm_to_vmem [thread:$0]  %s2770_s4, 2048, %s68_s24, [#allocation8], %s2569_s2, %s2569_s2, %s2570_s9  }
  0x56   :  { %2552 = dma.done.wait [#allocation3], 256  }
  0x57   :  { %2553 = vsyncadd [#allocation3], 4294967040 }
  0x58   :  { %2554 = dma.done.wait [#allocation5], 12800  }
  0x59   :  { %2555 = vsyncadd [#allocation5], 4294954496 }
  0x5a   :  { %2556 = dma.done.wait [#allocation8], 8192  }
  0x5b   :  { %2557 = vsyncadd [#allocation8], 4294959104  ;;  %v2571_v0 = vmov 0   ;;  %v2214_v1 = vld [vmem:[#allocation4 + $0x4] ss:$16 sps:$4 sm:$0xff]   ;;  %v157_v4 = vld [vmem:[#allocation2 + $0x8] sm:$0xff]  ;;  %v95_v58 = vlaneseq }
  0x5c   :  { %219 = vmatprep.mubr.bf16.mxu0 %v2571_v0  ;;  %262 = vmatprep.mubr.bf16.mxu1 %v2571_v0  ;;  %v2216_v2 = vld [vmem:[#allocation4] ss:$16 sps:$4 sm:$0xff]   ;;  %v2217_v6 = vld [vmem:[#allocation4 + $0xc] ss:$16 sps:$4 sm:$0xff]   ;;  %vm183_vm0 = vcmask 130048  }
  0x5d   :  { %v156_v3 = vld [vmem:[#allocation2] sm:$0xff]  ;;  %187 = vmatprep.subr.bf16.mxu0 %v2214_v1  ;;  %v2219_v7 = vld [vmem:[#allocation4 + $0x8] ss:$16 sps:$4 sm:$0xff]   ;;  %230 = vmatprep.subr.bf16.mxu1 %v2217_v6  ;;  %v2220_v8 = vld [vmem:[#allocation6] ss:$12 sps:$4 sm:$0xff]   ;;  %v2670_v59 = vshrl.u32 %v95_v58, 7 }
  0x5e   :  { %v162_v5 = vpack.c.bf16 %v157_v4, %v156_v3  ;;  %188 = vmatpush1.bf16.msra.mxu0 %v2216_v2  ;;  %v2222_v9 = vld [vmem:[#allocation6 + $0x4] ss:$12 sps:$4 sm:$0xff]   ;;  %231 = vmatpush1.bf16.msra.mxu1 %v2219_v7  ;;  %v2225_v10 = vld [vmem:[#allocation6 + $0x1c] ss:$12 sps:$4 sm:$0xff]   ;;  %v2228_v12 = vld [vmem:[#allocation6 + $0x34] ss:$12 sps:$4 sm:$0xff]  }
  0x5f   :  { %957 = vmatprep.subr.bf16.mxu0 %v2222_v9  ;;  %v2223_v11 = vld [vmem:[#allocation6 + $0x18] ss:$12 sps:$4 sm:$0xff]   ;;  %v2226_v13 = vld [vmem:[#allocation6 + $0x30] ss:$12 sps:$4 sm:$0xff]   ;;  %v2229_v15 = vld [vmem:[#allocation6 + $0x48] ss:$12 sps:$4 sm:$0xff]  }
  0x60   :  { %v2231_v14 = vld [vmem:[#allocation6 + $0x4c] ss:$12 sps:$4 sm:$0xff]   ;;  %v2234_v16 = vld [vmem:[#allocation6 + $0x64] ss:$12 sps:$4 sm:$0xff]   ;;  %v2247_v17 = vld [vmem:[#allocation6 + $0xc8] ss:$12 sps:$4 sm:$0xff]  }
  0x61   :  { %1962 = vmatmul.mubr.msk.bf16.vlgmr.msra.gmra.mrb[0].mxu0 %vm183_vm0, %v162_v5  ;;  %1963 = vmatmul.mubr.msk.bf16.vlgmr.msra.gmra.mrb[0].mxu1 %vm183_vm0, %v162_v5  ;;  %v2248_v18 = vld [vmem:[#allocation6 + $0x8] ss:$12 sps:$4 sm:$0xff]   ;;  %v2232_v19 = vld [vmem:[#allocation6 + $0x60] ss:$12 sps:$4 sm:$0xff]   ;;  %v2235_v23 = vld [vmem:[#allocation6 + $0x78] ss:$12 sps:$4 sm:$0xff]  }
  0x62   :  { %958 = vmatpush1.bf16.msra.mxu0 %v2220_v8  ;;  %v2237_v20 = vld [vmem:[#allocation6 + $0x7c] ss:$12 sps:$4 sm:$0xff]   ;;  %2125 = vmatprep.subr.bf16.mxu1 %v2247_v17  ;;  %v2252_v21 = vld [vmem:[#allocation6 + $0xe0] ss:$12 sps:$4 sm:$0xff]   ;;  %v2257_v24 = vld [vmem:[#allocation6 + $0xf8] ss:$12 sps:$4 sm:$0xff]  }
  0x63   :  { %959 = vmatprep.subr.bf16.mxu0 %v2225_v10  ;;  %2126 = vmatpush3.bf16.msra.mxu1 %v2248_v18  ;;  %v2253_v22 = vld [vmem:[#allocation6 + $0x20] ss:$12 sps:$4 sm:$0xff]   ;;  %v2258_v25 = vld [vmem:[#allocation6 + $0x38] ss:$12 sps:$4 sm:$0xff]   ;;  %v2238_v27 = vld [vmem:[#allocation6 + $0x90] ss:$12 sps:$4 sm:$0xff]  }
  0x64   :  { %2127 = vmatprep.subr.bf16.mxu1 %v2252_v21  ;;  %v2240_v26 = vld [vmem:[#allocation6 + $0x94] ss:$12 sps:$4 sm:$0xff]   ;;  %v2262_v28 = vld [vmem:[#allocation6 + $0x110] ss:$12 sps:$4 sm:$0xff]   ;;  %v2243_v30 = vld [vmem:[#allocation6 + $0xac] ss:$12 sps:$4 sm:$0xff]  }
  0x65   :  { %v2263_v29 = vld [vmem:[#allocation6 + $0x50] ss:$12 sps:$4 sm:$0xff]   ;;  %v2241_v31 = vld [vmem:[#allocation6 + $0xa8] ss:$12 sps:$4 sm:$0xff]   ;;  %v2244_v35 = vld [vmem:[#allocation6 + $0xc0] ss:$12 sps:$4 sm:$0xff]  }
  0x66   :  { %960 = vmatpush1.bf16.msra.mxu0 %v2223_v11  ;;  %v2267_v32 = vld [vmem:[#allocation6 + $0x128] ss:$12 sps:$4 sm:$0xff]   ;;  %v2246_v33 = vld [vmem:[#allocation6 + $0xc4] ss:$12 sps:$4 sm:$0xff]   ;;  %v2261_v40 = vld [vmem:[#allocation6 + $0x10c] ss:$12 sps:$4 sm:$0xff]  }
  0x67   :  { %961 = vmatprep.subr.bf16.mxu0 %v2228_v12  ;;  %2128 = vmatpush3.bf16.msra.mxu1 %v2253_v22  ;;  %v2268_v34 = vld [vmem:[#allocation6 + $0x68] ss:$12 sps:$4 sm:$0xff]   ;;  %v2249_v37 = vld [vmem:[#allocation6 + $0xd8] ss:$12 sps:$4 sm:$0xff]   ;;  %v2254_v39 = vld [vmem:[#allocation6 + $0xf0] ss:$12 sps:$4 sm:$0xff]  }
  0x68   :  { %2129 = vmatprep.subr.bf16.mxu1 %v2257_v24  ;;  %v2251_v36 = vld [vmem:[#allocation6 + $0xdc] ss:$12 sps:$4 sm:$0xff]   ;;  %v2256_v38 = vld [vmem:[#allocation6 + $0xf4] ss:$12 sps:$4 sm:$0xff]   ;;  %v2266_v42 = vld [vmem:[#allocation6 + $0x124] ss:$12 sps:$4 sm:$0xff]  }
  0x69   :  { %v2259_v41 = vld [vmem:[#allocation6 + $0x108] ss:$12 sps:$4 sm:$0xff]   ;;  %v2264_v43 = vld [vmem:[#allocation6 + $0x120] ss:$12 sps:$4 sm:$0xff]   ;;  %v2269_v46 = vld [vmem:[#allocation6 + $0x138] ss:$12 sps:$4 sm:$0xff]  }
  0x6a   :  { %962 = vmatpush1.bf16.msra.mxu0 %v2226_v13  ;;  %v2271_v44 = vld [vmem:[#allocation6 + $0x13c] ss:$12 sps:$4 sm:$0xff]   ;;  %v2272_v45 = vld [vmem:[#allocation6 + $0x140] ss:$12 sps:$4 sm:$0xff]   ;;  %v2277_v49 = vld [vmem:[#allocation6 + $0x158] ss:$12 sps:$4 sm:$0xff]  }
  0x6b   :  { %963 = vmatprep.subr.bf16.mxu0 %v2231_v14  ;;  %2130 = vmatpush3.bf16.msra.mxu1 %v2258_v25  ;;  %v2273_v47 = vld [vmem:[#allocation6 + $0x80] ss:$12 sps:$4 sm:$0xff]   ;;  %v2274_v50 = vld [vmem:[#allocation6 + $0x150] ss:$12 sps:$4 sm:$0xff]   ;;  %v2278_v51 = vld [vmem:[#allocation6 + $0x98] ss:$12 sps:$4 sm:$0xff]  }
  0x6c   :  { %2131 = vmatprep.subr.bf16.mxu1 %v2262_v28  ;;  %v2276_v48 = vld [vmem:[#allocation6 + $0x154] ss:$12 sps:$4 sm:$0xff]   ;;  %v2281_v52 = vld [vmem:[#allocation6 + $0x16c] ss:$12 sps:$4 sm:$0xff]   ;;  %v2282_v53 = vld [vmem:[#allocation6 + $0x170] ss:$12 sps:$4 sm:$0xff]  }
  0x6d   :  { %v2279_v54 = vld [vmem:[#allocation6 + $0x168] ss:$12 sps:$4 sm:$0xff]   ;;  %v2283_v55 = vld [vmem:[#allocation6 + $0xb0] ss:$12 sps:$4 sm:$0xff]   ;;  %v2673_v60 = vsub.s32 0, %v2670_v59  ;;  %v2679_v62 = vsub.s32 1, %v2670_v59 }
  0x6e   :  { %964 = vmatpush1.bf16.msra.mxu0 %v2229_v15  ;;  %v2286_v56 = vld [vmem:[#allocation6 + $0x184] ss:$12 sps:$4 sm:$0xff]   ;;  %v2287_v57 = vld [vmem:[#allocation6 + $0x248] ss:$12 sps:$4 sm:$0xff]   ;;  %v109_v63 = vsub.s32 3, %v2670_v59 }
  0x6f   :  { %965 = vmatprep.subr.bf16.mxu0 %v2234_v16  ;;  %2132 = vmatpush3.bf16.msra.mxu1 %v2263_v29  ;;  %v93_v61 = vld [vmem:[%s2771_s5] sm:$0xf] }
  0x70   :  { %2133 = vmatprep.subr.bf16.mxu1 %v2267_v32  ;;  %v98_v1 = vrot.slane %v93_v61, %v2673_v60  ;;  %v102_v2 = vrot.slane %v93_v61, %v2679_v62  ;;  %v110_v3 = vrot.slane %v93_v61, %v109_v63  ;;  %v2288_v32 = vld [vmem:[#allocation6 + $0x188] ss:$12 sps:$4 sm:$0xff]   ;;  %v2313_v63 = vld [vmem:[#allocation6 + $0x200] ss:$12 sps:$4 sm:$0xff]  }
  0x72   :  { %966 = vmatpush1.bf16.msra.mxu0 %v2232_v19  ;;  %v115_v4 = vpack.c.bf16 %v98_v1, %v98_v1  ;;  %v116_v5 = vpack.c.bf16 %v102_v2, %v102_v2  ;;  %v118_v6 = vpack.c.bf16 %v110_v3, %v110_v3  ;;  %v2316_v1 = vld [vmem:[#allocation6 + $0x214] ss:$12 sps:$4 sm:$0xff]   ;;  %v2317_v2 = vld [vmem:[#allocation6 + $0x2d8] ss:$12 sps:$4 sm:$0xff]  }
  0x73   :  { %967 = vmatprep.subr.bf16.mxu0 %v2237_v20  ;;  %2134 = vmatpush3.bf16.msra.mxu1 %v2268_v34 }
  0x74   :  { %2135 = vmatprep.subr.bf16.mxu1 %v2272_v45  ;;  %v278_v7 = vpack.i.b16 %v115_v4, %v115_v4  ;;  %v285_v8 = vpack.i.b16 %v116_v5, %v116_v5  ;;  %v299_v10 = vpack.i.b16 %v118_v6, %v118_v6  ;;  %v2298_v45 = vld [vmem:[#allocation6 + $0x1b8] ss:$12 sps:$4 sm:$0xff]   ;;  %v2314_v4 = vld [vmem:[#allocation6 + $0x210] ss:$12 sps:$4 sm:$0xff]  }
  0x75   :  { %v2318_v5 = vld [vmem:[#allocation6 + $0x218] ss:$12 sps:$4 sm:$0xff]  }
  0x76   :  { %968 = vmatpush1.bf16.msra.mxu0 %v2235_v23  ;;  %v283_v12 = vrot.slane %v278_v7, %v2673_v60  ;;  %v290_v14 = vrot.slane %v285_v8, %v2673_v60  ;;  %v304_v21 = vrot.slane %v299_v10, %v2673_v60  ;;  %v2321_v6 = vld [vmem:[#allocation6 + $0x22c] ss:$12 sps:$4 sm:$0xff]   ;;  %v2322_v7 = vld [vmem:[#allocation6 + $0x2f0] ss:$12 sps:$4 sm:$0xff]  }
  0x77   :  { %969 = vmatprep.subr.bf16.mxu0 %v2240_v26  ;;  %2136 = vmatpush3.bf16.msra.mxu1 %v2273_v47  ;;  %v2302_v47 = vld [vmem:[#allocation6 + $0x290] ss:$12 sps:$4 sm:$0xff]  }
  0x78   :  { %2137 = vmatprep.subr.bf16.mxu1 %v2277_v49  ;;  %v2299_v49 = vld [vmem:[#allocation6 + $0x1c8] ss:$12 sps:$4 sm:$0xff]   ;;  %v2323_v10 = vld [vmem:[#allocation6 + $0x230] ss:$12 sps:$4 sm:$0xff]  }
  0x7a   :  { %970 = vmatpush1.bf16.msra.mxu0 %v2238_v27 }
  0x7b   :  { %971 = vmatprep.subr.bf16.mxu0 %v2243_v30  ;;  %2138 = vmatpush3.bf16.msra.mxu1 %v2278_v51  ;;  %v2306_v51 = vld [vmem:[#allocation6 + $0x1e4] ss:$12 sps:$4 sm:$0xff]  }
  0x7c   :  { %2139 = vmatprep.subr.bf16.mxu1 %v2282_v53 }
  0x7e   :  { %972 = vmatpush1.bf16.msra.mxu0 %v2241_v31  ;;  %v2284_v31 = vld [vmem:[#allocation6 + $0x180] ss:$12 sps:$4 sm:$0xff]  }
  0x7f   :  { %973 = vmatprep.subr.bf16.mxu0 %v2246_v33  ;;  %2140 = vmatpush3.bf16.msra.mxu1 %v2283_v55  ;;  %v2308_v55 = vld [vmem:[#allocation6 + $0x1e8] ss:$12 sps:$4 sm:$0xff]  }
  0x80   :  { %2147 = vmatprep.subr.bf16.mxu1 %v2287_v57  ;;  %v2312_v57 = vld [vmem:[#allocation6 + $0x2c0] ss:$12 sps:$4 sm:$0xff]  }
  0x82   :  { %974 = vmatpush1.bf16.msra.mxu0 %v2244_v35  ;;  %v2291_v35 = vld [vmem:[#allocation6 + $0x19c] ss:$12 sps:$4 sm:$0xff]  }
  0x83   :  { %975 = vmatprep.subr.bf16.mxu0 %v2251_v36  ;;  %v2292_v36 = vld [vmem:[#allocation6 + $0x260] ss:$12 sps:$4 sm:$0xff]  }
  0x86   :  { %976 = vmatpush1.bf16.msra.mxu0 %v2249_v37 }
  0x87   :  { %977 = vmatprep.subr.bf16.mxu0 %v2256_v38  ;;  %v2694_v38 = vsub.s32 2, %v2670_v59 }
  0x8a   :  { %978 = vmatpush1.bf16.msra.mxu0 %v2254_v39  ;;  %v2289_v39 = vld [vmem:[#allocation6 + $0x198] ss:$12 sps:$4 sm:$0xff]  }
  0x8b   :  { %979 = vmatprep.subr.bf16.mxu0 %v2261_v40  ;;  %v2293_v40 = vld [vmem:[#allocation6 + $0x1a0] ss:$12 sps:$4 sm:$0xff]  }
  0x8e   :  { %980 = vmatpush1.bf16.msra.mxu0 %v2259_v41  ;;  %v2296_v41 = vld [vmem:[#allocation6 + $0x1b4] ss:$12 sps:$4 sm:$0xff]  }
  0x8f   :  { %981 = vmatprep.subr.bf16.mxu0 %v2266_v42  ;;  %v2297_v42 = vld [vmem:[#allocation6 + $0x278] ss:$12 sps:$4 sm:$0xff]  }
  0x92   :  { %982 = vmatpush1.bf16.msra.mxu0 %v2264_v43  ;;  %v106_v43 = vrot.slane %v93_v61, %v2694_v38  ;;  %v2309_v61 = vld [vmem:[#allocation6 + $0x1f8] ss:$12 sps:$4 sm:$0xff]  }
  0x93   :  { %983 = vmatprep.subr.bf16.mxu0 %v2271_v44  ;;  %v2294_v44 = vld [vmem:[#allocation6 + $0x1b0] ss:$12 sps:$4 sm:$0xff]  }
  0x96   :  { %984 = vmatpush1.bf16.msra.mxu0 %v2269_v46  ;;  %v2301_v46 = vld [vmem:[#allocation6 + $0x1cc] ss:$12 sps:$4 sm:$0xff]  }
  0x97   :  { %985 = vmatprep.subr.bf16.mxu0 %v2276_v48  ;;  %v117_v48 = vpack.c.bf16 %v106_v43, %v106_v43  ;;  %v2371_v43 = vld [vmem:[#allocation7 + $0x74] ss:$8 sps:$4 sm:$0xff]  }
  0x99   :  { %v292_v53 = vpack.i.b16 %v117_v48, %v117_v48  ;;  %v2375_v48 = vld [vmem:[#allocation7 + $0x90] ss:$8 sps:$4 sm:$0xff]  }
  0x9a   :  { %986 = vmatpush1.bf16.msra.mxu0 %v2274_v50  ;;  %v2303_v50 = vld [vmem:[#allocation6 + $0x1d0] ss:$12 sps:$4 sm:$0xff]  }
  0x9b   :  { %987 = vmatprep.subr.bf16.mxu0 %v2281_v52  ;;  %v2307_v52 = vld [vmem:[#allocation6 + $0x2a8] ss:$12 sps:$4 sm:$0xff]   ;;  %v297_v58 = vrot.slane %v292_v53, %v2673_v60  ;;  %v2386_v53 = vld [vmem:[#allocation7 + $0xc4] ss:$8 sps:$4 sm:$0xff]  }
  0x9e   :  { %988 = vmatpush1.bf16.msra.mxu0 %v2279_v54  ;;  %v2304_v54 = vld [vmem:[#allocation6 + $0x1e0] ss:$12 sps:$4 sm:$0xff]  }
  0x9f   :  { %1000 = vmatprep.subr.bf16.mxu0 %v2286_v56  ;;  %v2311_v56 = vld [vmem:[#allocation6 + $0x1fc] ss:$12 sps:$4 sm:$0xff]  }
 0x134   :  { %v221_v9 = vpop.f32.mrb[0].mxu0  ;;  %v2686_v15 = vpop.f32.mrb[0].mxu1 }
 0x135   :  { %v223_v11 = vpop.f32.mrb[1].mxu0  ;;  %v266_v18 = vpop.f32.mrb[1].mxu1 }
 0x136   :  { %v225_v13 = vpop.f32.mrb[2].mxu0  ;;  %v2688_v20 = vpop.f32.mrb[2].mxu1 }
 0x137   :  { %v273_v16 = vpack.c.bf16 %v225_v13, %v221_v9  ;;  %v227_v17 = vpop.f32.mrb[3].mxu0  ;;  %v275_v23 = vpack.c.bf16 %v2688_v20, %v2686_v15  ;;  %v270_v24 = vpop.f32.mrb[3].mxu1  ;;  %v2319_v9 = vld [vmem:[#allocation6 + $0x228] ss:$12 sps:$4 sm:$0xff]   ;;  %v2324_v13 = vld [vmem:[#allocation6 + $0x240] ss:$12 sps:$4 sm:$0xff]  }
 0x138   :  { %v274_v19 = vpack.c.bf16 %v227_v17, %v223_v11  ;;  %v276_v26 = vpack.c.bf16 %v270_v24, %v266_v18  ;;  %v2326_v11 = vld [vmem:[#allocation6 + $0x244] ss:$12 sps:$4 sm:$0xff]   ;;  %v2335_v18 = vld [vmem:[#allocation6 + $0x28c] ss:$12 sps:$4 sm:$0xff]   ;;  %v2344_v24 = vld [vmem:[#allocation6 + $0x2d4] ss:$12 sps:$4 sm:$0xff]  }
 0x139   :  { %v305_v22 = vadd.bf16 %v283_v12, %v273_v16  ;;  %v307_v3 = vadd.bf16 %v297_v58, %v275_v23  ;;  %v2327_v15 = vld [vmem:[#allocation6 + $0x258] ss:$12 sps:$4 sm:$0xff]   ;;  %v2332_v16 = vld [vmem:[#allocation6 + $0x274] ss:$12 sps:$4 sm:$0xff]   ;;  %v2330_v17 = vld [vmem:[#allocation6 + $0x270] ss:$12 sps:$4 sm:$0xff]  }
 0x13a   :  { %v306_v25 = vadd.bf16 %v290_v14, %v274_v19  ;;  %v308_v29 = vadd.bf16 %v304_v21, %v276_v26  ;;  %v2329_v14 = vld [vmem:[#allocation6 + $0x25c] ss:$12 sps:$4 sm:$0xff]   ;;  %v2338_v20 = vld [vmem:[#allocation6 + $0x2a4] ss:$12 sps:$4 sm:$0xff]   ;;  %v2336_v21 = vld [vmem:[#allocation6 + $0x2a0] ss:$12 sps:$4 sm:$0xff]  }
 0x13b   :  { %v309_v27 = vmul.bf16 1009007652, %v305_v22  ;;  %v311_v8 = vmul.bf16 1009007652, %v307_v3  ;;  %v2333_v19 = vld [vmem:[#allocation6 + $0x288] ss:$12 sps:$4 sm:$0xff]  }
 0x13c   :  { %v310_v28 = vmul.bf16 1009007652, %v306_v25  ;;  %v312_v33 = vmul.bf16 1009007652, %v308_v29  ;;  %v2339_v23 = vld [vmem:[#allocation6 + $0x2b8] ss:$12 sps:$4 sm:$0xff]  }
 0x13d   :  { %v313_v34 = vmax.bf16 %v309_v27, %v305_v22  ;;  %v315_v12 = vmax.bf16 %v311_v8, %v307_v3  ;;  %v2341_v22 = vld [vmem:[#allocation6 + $0x2bc] ss:$12 sps:$4 sm:$0xff]   ;;  %v2347_v26 = vld [vmem:[#allocation6 + $0x2ec] ss:$12 sps:$4 sm:$0xff]   ;;  %v119_v8 = vld [vmem:[%s2771_s5 + $0x4] sm:$0x7] }
 0x13e   :  { %v314_v30 = vmax.bf16 %v310_v28, %v306_v25  ;;  %v316_v37 = vmax.bf16 %v312_v33, %v308_v29  ;;  %v2342_v25 = vld [vmem:[#allocation6 + $0x2d0] ss:$12 sps:$4 sm:$0xff]   ;;  %v2345_v27 = vld [vmem:[#allocation6 + $0x2e8] ss:$12 sps:$4 sm:$0xff]   ;;  %v2350_v28 = vld [vmem:[#allocation7 + $0x4] ss:$8 sps:$4 sm:$0xff]  }
 0x13f   :  { %v2348_v29 = vld [vmem:[#allocation7] ss:$8 sps:$4 sm:$0xff]   ;;  %v2392_v3 = vld [vmem:[#allocation7 + $0xe4] ss:$8 sps:$4 sm:$0xff]  }
 0x140   :  { %989 = vmatprep.mubr.bf16.mxu0 %v314_v30  ;;  %1075 = vmatprep.mubr.bf16.mxu1 %v314_v30  ;;  %v2353_v30 = vld [vmem:[#allocation7 + $0x14] ss:$8 sps:$4 sm:$0xff]   ;;  %v2354_v33 = vld [vmem:[#allocation7 + $0x20] ss:$8 sps:$4 sm:$0xff]  }
 0x141   :  { %990 = vmatmul.mubr.bf16.vlgmr.msra.gmra.mrb[4].mxu0 %v313_v34  ;;  %1076 = vmatmul.mubr.bf16.vlgmr.msra.gmra.mrb[4].mxu1 %v313_v34  ;;  %v2359_v34 = vld [vmem:[#allocation7 + $0x34] ss:$8 sps:$4 sm:$0xff]  }
 0x142   :  { %1001 = vmatpush1.bf16.msra.mxu0 %v2284_v31  ;;  %2148 = vmatpush3.bf16.msra.mxu1 %v2288_v32  ;;  %v2351_v31 = vld [vmem:[#allocation7 + $0x10] ss:$8 sps:$4 sm:$0xff]   ;;  %v2356_v32 = vld [vmem:[#allocation7 + $0x24] ss:$8 sps:$4 sm:$0xff]  }
 0x143   :  { %1002 = vmatprep.subr.bf16.mxu0 %v2291_v35  ;;  %2149 = vmatprep.subr.bf16.mxu1 %v2292_v36  ;;  %v2357_v35 = vld [vmem:[#allocation7 + $0x30] ss:$8 sps:$4 sm:$0xff]   ;;  %v2362_v36 = vld [vmem:[#allocation7 + $0x44] ss:$8 sps:$4 sm:$0xff]  }
 0x144   :  { %1116 = vmatprep.mubr.bf16.mxu1 %v316_v37  ;;  %1032 = vmatprep.mubr.bf16.mxu0 %v316_v37  ;;  %v2360_v37 = vld [vmem:[#allocation7 + $0x40] ss:$8 sps:$4 sm:$0xff]  }
 0x146   :  { %1003 = vmatpush1.bf16.msra.mxu0 %v2289_v39  ;;  %2150 = vmatpush3.bf16.msra.mxu1 %v2293_v40  ;;  %v2363_v39 = vld [vmem:[#allocation7 + $0x50] ss:$8 sps:$4 sm:$0xff]   ;;  %v2365_v40 = vld [vmem:[#allocation7 + $0x54] ss:$8 sps:$4 sm:$0xff]  }
 0x147   :  { %1004 = vmatprep.subr.bf16.mxu0 %v2296_v41  ;;  %2151 = vmatprep.subr.bf16.mxu1 %v2297_v42  ;;  %v2368_v41 = vld [vmem:[#allocation7 + $0x64] ss:$8 sps:$4 sm:$0xff]   ;;  %v2366_v42 = vld [vmem:[#allocation7 + $0x60] ss:$8 sps:$4 sm:$0xff]  }
 0x14a   :  { %1005 = vmatpush1.bf16.msra.mxu0 %v2294_v44  ;;  %2152 = vmatpush3.bf16.msra.mxu1 %v2298_v45  ;;  %v2369_v44 = vld [vmem:[#allocation7 + $0x70] ss:$8 sps:$4 sm:$0xff]   ;;  %v2374_v45 = vld [vmem:[#allocation7 + $0x84] ss:$8 sps:$4 sm:$0xff]  }
 0x14b   :  { %1006 = vmatprep.subr.bf16.mxu0 %v2301_v46  ;;  %2153 = vmatprep.subr.bf16.mxu1 %v2302_v47  ;;  %v2372_v46 = vld [vmem:[#allocation7 + $0x80] ss:$8 sps:$4 sm:$0xff]   ;;  %v2377_v47 = vld [vmem:[#allocation7 + $0x94] ss:$8 sps:$4 sm:$0xff]  }
 0x14e   :  { %1007 = vmatpush1.bf16.msra.mxu0 %v2299_v49  ;;  %2154 = vmatpush3.bf16.msra.mxu1 %v2303_v50  ;;  %v2380_v49 = vld [vmem:[#allocation7 + $0xa4] ss:$8 sps:$4 sm:$0xff]   ;;  %v2378_v50 = vld [vmem:[#allocation7 + $0xa0] ss:$8 sps:$4 sm:$0xff]  }
 0x14f   :  { %1008 = vmatprep.subr.bf16.mxu0 %v2306_v51  ;;  %2155 = vmatprep.subr.bf16.mxu1 %v2307_v52  ;;  %v2383_v51 = vld [vmem:[#allocation7 + $0xb4] ss:$8 sps:$4 sm:$0xff]   ;;  %v2381_v52 = vld [vmem:[#allocation7 + $0xb0] ss:$8 sps:$4 sm:$0xff]  }
 0x152   :  { %1009 = vmatpush1.bf16.msra.mxu0 %v2304_v54  ;;  %2156 = vmatpush3.bf16.msra.mxu1 %v2308_v55  ;;  %v2384_v55 = vld [vmem:[#allocation7 + $0xc0] ss:$8 sps:$4 sm:$0xff]  }
 0x153   :  { %1010 = vmatprep.subr.bf16.mxu0 %v2311_v56  ;;  %2157 = vmatprep.subr.bf16.mxu1 %v2312_v57  ;;  %v2389_v57 = vld [vmem:[#allocation7 + $0xd4] ss:$8 sps:$4 sm:$0xff]  }
 0x156   :  { %1011 = vmatpush1.bf16.msra.mxu0 %v2309_v61  ;;  %2158 = vmatpush3.bf16.msra.mxu1 %v2313_v63 }
 0x157   :  { %1012 = vmatprep.subr.bf16.mxu0 %v2316_v1  ;;  %2159 = vmatprep.subr.bf16.mxu1 %v2317_v2  ;;  %v2387_v2 = vld [vmem:[#allocation7 + $0xd0] ss:$8 sps:$4 sm:$0xff]  }
 0x15a   :  { %1013 = vmatpush1.bf16.msra.mxu0 %v2314_v4  ;;  %2160 = vmatpush3.bf16.msra.mxu1 %v2318_v5  ;;  %v2390_v4 = vld [vmem:[#allocation7 + $0xe0] ss:$8 sps:$4 sm:$0xff]   ;;  %v2395_v5 = vld [vmem:[#allocation7 + $0xf4] ss:$8 sps:$4 sm:$0xff]  }
 0x15b   :  { %1014 = vmatprep.subr.bf16.mxu0 %v2321_v6  ;;  %2161 = vmatprep.subr.bf16.mxu1 %v2322_v7  ;;  %v2393_v6 = vld [vmem:[#allocation7 + $0xf0] ss:$8 sps:$4 sm:$0xff]   ;;  %v2398_v7 = vld [vmem:[#allocation7 + $0x104] ss:$8 sps:$4 sm:$0xff]  }
 0x15e   :  { %1015 = vmatpush1.bf16.msra.mxu0 %v2319_v9  ;;  %2162 = vmatpush3.bf16.msra.mxu1 %v2323_v10  ;;  %v132_v9 = vrot.slane %v119_v8, %v2694_v38 }
 0x15f   :  { %1016 = vmatprep.subr.bf16.mxu0 %v2326_v11  ;;  %1666 = vmatprep.subr.bf16.mxu1 %v2350_v28 }
 0x160   :  { %v138_v10 = vpack.c.bf16 %v132_v9, %v132_v9 }
 0x161   :  { %1117 = vmatmul.mubr.bf16.vlgmr.msra.gmra.mrb[8].mxu1 %v315_v12 }
 0x162   :  { %1017 = vmatpush1.bf16.msra.mxu0 %v2324_v13  ;;  %1667 = vmatpush1.bf16.msra.mxu1 %v2348_v29 }
 0x163   :  { %1018 = vmatprep.subr.bf16.mxu0 %v2329_v14  ;;  %1668 = vmatprep.subr.bf16.mxu1 %v2353_v30  ;;  %v2420_v30 = vld [vmem:[#allocation9 + $0x40] sm:$0xff]  }
 0x166   :  { %1019 = vmatpush1.bf16.msra.mxu0 %v2327_v15  ;;  %1669 = vmatpush1.bf16.msra.mxu1 %v2351_v31  ;;  %v1143_v15 = vpack.i.b16 %v138_v10, %v138_v10  ;;  %v2421_v31 = vld [vmem:[#allocation9] sm:$0xff]  }
 0x167   :  { %1020 = vmatprep.subr.bf16.mxu0 %v2332_v16  ;;  %1670 = vmatprep.subr.bf16.mxu1 %v2356_v32  ;;  %v2422_v32 = vld [vmem:[#allocation9 + $0x48] sm:$0xff]  }
 0x16a   :  { %1021 = vmatpush1.bf16.msra.mxu0 %v2330_v17  ;;  %1671 = vmatpush1.bf16.msra.mxu1 %v2354_v33  ;;  %v124_v33 = vrot.slane %v119_v8, %v2673_v60 }
 0x16b   :  { %1022 = vmatprep.subr.bf16.mxu0 %v2335_v18  ;;  %1672 = vmatprep.subr.bf16.mxu1 %v2359_v34  ;;  %v128_v34 = vrot.slane %v119_v8, %v2679_v62 }
 0x16e   :  { %1023 = vmatpush1.bf16.msra.mxu0 %v2333_v19  ;;  %1673 = vmatpush1.bf16.msra.mxu1 %v2357_v35  ;;  %v2423_v35 = vld [vmem:[#allocation9 + $0x8] sm:$0xff]  }
 0x16f   :  { %1024 = vmatprep.subr.bf16.mxu0 %v2338_v20  ;;  %1674 = vmatprep.subr.bf16.mxu1 %v2362_v36  ;;  %v1148_v20 = vrot.slane %v1143_v15, %v2673_v60 }
 0x172   :  { %1025 = vmatpush1.bf16.msra.mxu0 %v2336_v21  ;;  %1675 = vmatpush1.bf16.msra.mxu1 %v2360_v37 }
 0x173   :  { %1026 = vmatprep.subr.bf16.mxu0 %v2341_v22  ;;  %1676 = vmatprep.subr.bf16.mxu1 %v2365_v40  ;;  %v136_v40 = vpack.c.bf16 %v124_v33, %v124_v33 }
 0x176   :  { %1027 = vmatpush1.bf16.msra.mxu0 %v2339_v23  ;;  %1677 = vmatpush1.bf16.msra.mxu1 %v2363_v39  ;;  %v2424_v39 = vld [vmem:[#allocation9 + $0x50] sm:$0xff]  }
 0x177   :  { %1028 = vmatprep.subr.bf16.mxu0 %v2344_v24  ;;  %1678 = vmatprep.subr.bf16.mxu1 %v2368_v41  ;;  %v137_v41 = vpack.c.bf16 %v128_v34, %v128_v34 }
 0x17a   :  { %1029 = vmatpush1.bf16.msra.mxu0 %v2342_v25  ;;  %1679 = vmatpush1.bf16.msra.mxu1 %v2366_v42  ;;  %v2425_v42 = vld [vmem:[#allocation9 + $0x10] sm:$0xff]  }
 0x17b   :  { %1030 = vmatprep.subr.bf16.mxu0 %v2347_v26  ;;  %1680 = vmatprep.subr.bf16.mxu1 %v2371_v43 }
 0x17e   :  { %1031 = vmatpush1.bf16.msra.mxu0 %v2345_v27  ;;  %1681 = vmatpush1.bf16.msra.mxu1 %v2369_v44 }
 0x17f   :  { %1682 = vmatprep.subr.bf16.mxu1 %v2374_v45  ;;  %2169 = vmatprep.subr.bf16.mxu0 %v2420_v30  ;;  %v2426_v45 = vld [vmem:[#allocation9 + $0x58] sm:$0xff]  }
 0x181   :  { %1033 = vmatmul.mubr.bf16.vlgmr.msra.gmra.mrb[4].mxu0 %v315_v12 }
 0x182   :  { %1683 = vmatpush1.bf16.msra.mxu1 %v2372_v46  ;;  %2170 = vmatpush3.bf16.msra.mxu0 %v2421_v31  ;;  %v1129_v46 = vpack.i.b16 %v136_v40, %v136_v40 }
 0x183   :  { %1684 = vmatprep.subr.bf16.mxu1 %v2377_v47  ;;  %2171 = vmatprep.subr.bf16.mxu0 %v2422_v32  ;;  %v1136_v47 = vpack.i.b16 %v137_v41, %v137_v41 }
 0x186   :  { %1685 = vmatpush1.bf16.msra.mxu1 %v2375_v48  ;;  %2172 = vmatpush3.bf16.msra.mxu0 %v2423_v35  ;;  %v2427_v48 = vld [vmem:[#allocation9 + $0x18] sm:$0xff]  }
 0x187   :  { %1686 = vmatprep.subr.bf16.mxu1 %v2380_v49  ;;  %2173 = vmatprep.subr.bf16.mxu0 %v2424_v39 }
 0x18a   :  { %1687 = vmatpush1.bf16.msra.mxu1 %v2378_v50  ;;  %2174 = vmatpush3.bf16.msra.mxu0 %v2425_v42 }
 0x18b   :  { %1688 = vmatprep.subr.bf16.mxu1 %v2383_v51  ;;  %2175 = vmatprep.subr.bf16.mxu0 %v2426_v45 }
 0x18e   :  { %1689 = vmatpush1.bf16.msra.mxu1 %v2381_v52  ;;  %v2428_v52 = vld [vmem:[#allocation9 + $0x60] sm:$0xff]   ;;  %2176 = vmatpush3.bf16.msra.mxu0 %v2427_v48 }
 0x18f   :  { %1690 = vmatprep.subr.bf16.mxu1 %v2386_v53  ;;  %2177 = vmatprep.subr.bf16.mxu0 %v2428_v52 }
 0x192   :  { %1691 = vmatpush1.bf16.msra.mxu1 %v2384_v55 }
 0x193   :  { %1692 = vmatprep.subr.bf16.mxu1 %v2389_v57 }
 0x196   :  { %1693 = vmatpush1.bf16.msra.mxu1 %v2387_v2 }
 0x197   :  { %1694 = vmatprep.subr.bf16.mxu1 %v2392_v3 }
 0x19a   :  { %1695 = vmatpush1.bf16.msra.mxu1 %v2390_v4 }
 0x19b   :  { %1696 = vmatprep.subr.bf16.mxu1 %v2395_v5 }
 0x19e   :  { %1697 = vmatpush1.bf16.msra.mxu1 %v2393_v6 }
 0x19f   :  { %1709 = vmatprep.subr.bf16.mxu1 %v2398_v7 }
 0x214   :  { %v2141_v54 = vpop.f32.mrb[4].mxu1 }
 0x215   :  { %v2142_v56 = vpop.f32.mrb[5].mxu1 }
 0x216   :  { %v2143_v58 = vadd.f32 %v2142_v56, %v2141_v54  ;;  %v2144_v61 = vpop.f32.mrb[6].mxu1  ;;  %v1134_v54 = vrot.slane %v1129_v46, %v2673_v60  ;;  %v1141_v56 = vrot.slane %v1136_v47, %v2673_v60 }
 0x217   :  { %v2145_v63 = vpop.f32.mrb[7].mxu1 }
 0x218   :  { %v2146_v1 = vadd.f32 %v2145_v63, %v2144_v61  ;;  %v2429_v61 = vld [vmem:[#allocation9 + $0x20] sm:$0xff]  }
 0x219   :  { %2178 = vmatpush3.bf16.msra.mxu0 %v2429_v61 }
 0x234   :  { %v2163_v11 = vpop.f32.mrb[8].mxu1 }
 0x235   :  { %v2164_v12 = vpop.f32.mrb[9].mxu1 }
 0x236   :  { %v2165_v13 = vadd.f32 %v2164_v12, %v2163_v11  ;;  %v2166_v14 = vpop.f32.mrb[10].mxu1 }
 0x237   :  { %v2167_v16 = vpop.f32.mrb[11].mxu1 }
 0x238   :  { %v1119_v17 = vadd.f32 %v2165_v13, %v2143_v58  ;;  %v2168_v18 = vadd.f32 %v2167_v16, %v2166_v14 }
 0x23a   :  { %v1122_v19 = vadd.f32 %v2168_v18, %v2146_v1 }
 0x23c   :  { %v1127_v21 = vpack.c.bf16 %v1122_v19, %v1119_v17 }
 0x23e   :  { %v1151_v22 = vadd.bf16 %v1148_v20, %v1127_v21 }
 0x240   :  { %v1154_v23 = vmul.bf16 1009007652, %v1151_v22 }
 0x242   :  { %v2706_v24 = vmax.bf16 %v1154_v23, %v1151_v22 }
 0x244   :  { %v1160_v25 = vunpack.c.l.bf16 %v2706_v24  ;;  %v1163_v26 = vunpack.c.h.bf16 %v2706_v24 }
 0x246   :  { %v1178_v27 = vadd.f32 %v1163_v26, %v1160_v25  ;;  %v1187_v28 = vmul.f32 %v1160_v25, %v1160_v25  ;;  %v1190_v29 = vmul.f32 %v1163_v26, %v1163_v26 }
 0x248   :  { %v1179_v36 = vrot.slane %v1178_v27, 4  ;;  %v1205_v37 = vadd.f32 %v1190_v29, %v1187_v28 }
 0x24a   :  { %v1180_v43 = vadd.f32 %v1179_v36, %v1178_v27  ;;  %v1206_v44 = vrot.slane %v1205_v37, 4 }
 0x24c   :  { %v1181_v49 = vrot.slane %v1180_v43, 2  ;;  %v1207_v50 = vadd.f32 %v1206_v44, %v1205_v37 }
 0x24e   :  { %v1182_v63 = vadd.f32 %v1181_v49, %v1180_v43  ;;  %v1208_v1 = vrot.slane %v1207_v50, 2 }
 0x250   :  { %v1183_v6 = vrot.slane %v1182_v63, 1  ;;  %v1209_v7 = vadd.f32 %v1208_v1, %v1207_v50 }
 0x252   :  { %v1184_v13 = vadd.f32 %v1183_v6, %v1182_v63  ;;  %v1210_v14 = vrot.slane %v1209_v7, 1 }
 0x254   :  { %v1034_v51 = vpop.f32.mrb[4].mxu0  ;;  %v1211_v26 = vadd.f32 %v1210_v14, %v1209_v7  ;;  %v2722_v27 = vmul.f32 0.0625, %v1184_v13 }
 0x255   :  { %v1036_v53 = vpop.f32.mrb[5].mxu0 }
 0x256   :  { %v1038_v55 = vpop.f32.mrb[6].mxu0  ;;  %v1217_v36 = vmul.f32 0.0625, %v1211_v26  ;;  %v1220_v37 = vmul.f32 %v2722_v27, %v2722_v27 }
 0x257   :  { %v1125_v57 = vpack.c.bf16 %v1038_v55, %v1034_v51  ;;  %v1040_v58 = vpop.f32.mrb[7].mxu0 }
 0x258   :  { %v1126_v2 = vpack.c.bf16 %v1040_v58, %v1036_v53  ;;  %v1223_v47 = vsub.f32 %v1217_v36, %v1220_v37 }
 0x259   :  { %v1149_v3 = vadd.bf16 %v1134_v54, %v1125_v57 }
 0x25a   :  { %v1150_v4 = vadd.bf16 %v1141_v56, %v1126_v2  ;;  %v1226_v56 = vmax.f32 %v1223_v47, 0.0 }
 0x25b   :  { %v1152_v5 = vmul.bf16 1009007652, %v1149_v3 }
 0x25c   :  { %v1153_v8 = vmul.bf16 1009007652, %v1150_v4 }
 0x25d   :  { %v2714_v9 = vmax.bf16 %v1152_v5, %v1149_v3 }
 0x25e   :  { %v2716_v10 = vmax.bf16 %v1153_v8, %v1150_v4  ;;  %v1229_v4 = vadd.f32 1e-05, %v1226_v56 }
 0x25f   :  { %v1158_v11 = vunpack.c.l.bf16 %v2714_v9  ;;  %v1161_v12 = vunpack.c.h.bf16 %v2714_v9 }
 0x260   :  { %v1159_v15 = vunpack.c.l.bf16 %v2716_v10  ;;  %v1162_v16 = vunpack.c.h.bf16 %v2716_v10  ;;  %2436 = vrsqrt.f32 %v1229_v4 }
 0x261   :  { %v1164_v17 = vadd.f32 %v1161_v12, %v1158_v11  ;;  %v1185_v18 = vmul.f32 %v1158_v11, %v1158_v11  ;;  %v1188_v19 = vmul.f32 %v1161_v12, %v1161_v12  ;;  %v2572_v12 = vmov 1966171168  }
 0x262   :  { %v1171_v20 = vadd.f32 %v1162_v16, %v1159_v15  ;;  %v1186_v21 = vmul.f32 %v1159_v15, %v1159_v15  ;;  %v1189_v22 = vmul.f32 %v1162_v16, %v1162_v16  ;;  %v1238_v13 = vunpack.c.l.s4 %v2572_v12  ;;  %v2410_v12 = vld [vmem:[#allocation7 + $0x144] ss:$8 sps:$4 sm:$0xff]  }
 0x263   :  { %v1165_v23 = vrot.slane %v1164_v17, 4  ;;  %v1191_v25 = vadd.f32 %v1188_v19, %v1185_v18 }
 0x264   :  { %v1172_v28 = vrot.slane %v1171_v20, 4  ;;  %v1198_v29 = vadd.f32 %v1189_v22, %v1186_v21  ;;  %v1239_v14 = vunpack.c.0.s8 %v1238_v13  ;;  %v2408_v13 = vld [vmem:[#allocation7 + $0x140] ss:$8 sps:$4 sm:$0xff]  }
 0x265   :  { %v1166_v30 = vadd.f32 %v1165_v23, %v1164_v17  ;;  %v1192_v31 = vrot.slane %v1191_v25, 4  ;;  %v139_v23 = vld [vmem:[%s2771_s5 + $0x7] sm:$0x7] }
 0x266   :  { %v1173_v32 = vadd.f32 %v1172_v28, %v1171_v20  ;;  %v1199_v33 = vrot.slane %v1198_v29, 4  ;;  %v1242_v17 = vsub.s32 %v1239_v14, %v2670_v59  ;;  %v2413_v14 = vld [vmem:[#allocation7 + $0x154] ss:$8 sps:$4 sm:$0xff]  }
 0x267   :  { %v1167_v34 = vrot.slane %v1166_v30, 2  ;;  %v1193_v35 = vadd.f32 %v1192_v31, %v1191_v25 }
 0x268   :  { %v1174_v39 = vrot.slane %v1173_v32, 2  ;;  %v1200_v40 = vadd.f32 %v1199_v33, %v1198_v29 }
 0x269   :  { %v1168_v41 = vadd.f32 %v1167_v34, %v1166_v30  ;;  %v1194_v42 = vrot.slane %v1193_v35, 2 }
 0x26a   :  { %v1175_v43 = vadd.f32 %v1174_v39, %v1173_v32  ;;  %v1201_v44 = vrot.slane %v1200_v40, 2  ;;  %v2437_v15 = vpop.eup %2436 }
 0x26b   :  { %v1169_v45 = vrot.slane %v1168_v41, 1  ;;  %v1195_v46 = vadd.f32 %v1194_v42, %v1193_v35  ;;  %v1250_v21 = vrot.slane %v2437_v15, %v1242_v17  ;;  %v2411_v15 = vld [vmem:[#allocation7 + $0x150] ss:$8 sps:$4 sm:$0xff]  }
 0x26c   :  { %v1176_v48 = vrot.slane %v1175_v43, 1  ;;  %v1202_v49 = vadd.f32 %v1201_v44, %v1200_v40 }
 0x26d   :  { %v1170_v50 = vadd.f32 %v1169_v45, %v1168_v41  ;;  %v1196_v51 = vrot.slane %v1195_v46, 1 }
 0x26e   :  { %v1203_v52 = vrot.slane %v1202_v49, 1  ;;  %v1177_v53 = vadd.f32 %v1176_v48, %v1175_v43 }
 0x26f   :  { %v1197_v54 = vadd.f32 %v1196_v51, %v1195_v46  ;;  %v1212_v55 = vmul.f32 0.0625, %v1170_v50  ;;  %v140_v46 = vld [vmem:[%s2771_s5 + $0xa] sm:$0x7] }
 0x270   :  { %v1204_v57 = vadd.f32 %v1203_v52, %v1202_v49  ;;  %v1213_v58 = vmul.f32 0.0625, %v1177_v53 }
 0x271   :  { %v1215_v61 = vmul.f32 0.0625, %v1197_v54  ;;  %v1218_v63 = vmul.f32 %v1212_v55, %v1212_v55 }
 0x272   :  { %v1216_v1 = vmul.f32 0.0625, %v1204_v57  ;;  %v1219_v2 = vmul.f32 %v1213_v58, %v1213_v58 }
 0x273   :  { %v1221_v3 = vsub.f32 %v1215_v61, %v1218_v63 }
 0x274   :  { %v1222_v5 = vsub.f32 %v1216_v1, %v1219_v2 }
 0x275   :  { %v1224_v6 = vmax.f32 %v1221_v3, 0.0  ;;  %v2396_v3 = vld [vmem:[#allocation7 + $0x100] ss:$8 sps:$4 sm:$0xff]  }
 0x276   :  { %v1225_v7 = vmax.f32 %v1222_v5, 0.0  ;;  %v2401_v5 = vld [vmem:[#allocation7 + $0x114] ss:$8 sps:$4 sm:$0xff]  }
 0x277   :  { %v1227_v8 = vadd.f32 1e-05, %v1224_v6  ;;  %v2399_v6 = vld [vmem:[#allocation7 + $0x110] ss:$8 sps:$4 sm:$0xff]  }
 0x278   :  { %v1228_v11 = vadd.f32 1e-05, %v1225_v7  ;;  %v2404_v7 = vld [vmem:[#allocation7 + $0x124] ss:$8 sps:$4 sm:$0xff]  }
 0x279   :  { %2438 = vrsqrt.f32 %v1227_v8  ;;  %v2402_v8 = vld [vmem:[#allocation7 + $0x120] ss:$8 sps:$4 sm:$0xff]  }
 0x27a   :  { %2440 = vrsqrt.f32 %v1228_v11  ;;  %v2407_v11 = vld [vmem:[#allocation7 + $0x134] ss:$8 sps:$4 sm:$0xff]  }
 0x283   :  { %v2439_v16 = vpop.eup %2438 }
 0x284   :  { %v2441_v18 = vpop.eup %2440 }
 0x285   :  { %v1236_v19 = vcombine.low %v2439_v16, %v2441_v18  ;;  %v2416_v16 = vld [vmem:[#allocation7 + $0x164] ss:$8 sps:$4 sm:$0xff]   ;;  %v2417_v18 = vld [vmem:[#allocation7 + $0x170] ss:$8 sps:$4 sm:$0xff]  }
 0x287   :  { %v1243_v20 = vrot.slane %v1236_v19, %v1242_v17  ;;  %v2430_v19 = vld [vmem:[#allocation9 + $0x68] sm:$0xff]  }
 0x288   :  { %2179 = vmatprep.subr.bf16.mxu0 %v2430_v19 }
 0x289   :  { %v1251_v22 = vcombine.low %v1243_v20, %v1250_v21  ;;  %v2431_v20 = vld [vmem:[#allocation9 + $0x28] sm:$0xff]   ;;  %v2432_v21 = vld [vmem:[#allocation9 + $0x70] sm:$0xff]  }
 0x28a   :  { %2180 = vmatpush3.bf16.msra.mxu0 %v2431_v20 }
 0x28b   :  { %v1258_v25 = vrot.slane %v1251_v22, %v1242_v17  ;;  %v2433_v22 = vld [vmem:[#allocation9 + $0x30] sm:$0xff]   ;;  %2181 = vmatprep.subr.bf16.mxu0 %v2432_v21 }
 0x28d   :  { %v1260_v26 = vmul.f32 %v1258_v25, %v139_v23  ;;  %v2434_v23 = vld [vmem:[#allocation9 + $0x78] sm:$0xff]  }
 0x28e   :  { %2182 = vmatpush3.bf16.msra.mxu0 %v2433_v22  ;;  %v2435_v25 = vld [vmem:[#allocation9 + $0x38] sm:$0xff]  }
 0x28f   :  { %v1265_v28 = vrot.slane %v1260_v26, %v2673_v60  ;;  %v1269_v29 = vrot.slane %v1260_v26, %v2679_v62  ;;  %v1273_v30 = vrot.slane %v1260_v26, %v2694_v38  ;;  %2183 = vmatprep.subr.bf16.mxu0 %v2434_v23  ;;  %v141_v26 = vld [vmem:[%s2771_s5 + $0xd] sm:$0x3] }
 0x291   :  { %v1277_v31 = vmul.f32 %v1265_v28, %v1212_v55  ;;  %v1278_v32 = vmul.f32 %v1269_v29, %v1213_v58  ;;  %v1279_v59 = vmul.f32 %v1273_v30, %v2722_v27  ;;  %v1309_v33 = vpack.c.bf16 %v1269_v29, %v1269_v29 }
 0x292   :  { %v1308_v34 = vpack.c.bf16 %v1265_v28, %v1265_v28  ;;  %v1310_v45 = vpack.c.bf16 %v1273_v30, %v1273_v30  ;;  %2184 = vmatpush3.bf16.msra.mxu0 %v2435_v25  ;;  %v146_v28 = vrot.slane %v141_v26, %v2673_v60  ;;  %v150_v29 = vrot.slane %v141_v26, %v2679_v62 }
 0x293   :  { %v1283_v35 = vcombine.low %v1277_v31, %v1278_v32  ;;  %v1319_v36 = vpack.i.b16 %v1309_v33, %v1309_v33  ;;  %v1297_v40 = vrot.slane %v1279_v59, %v1242_v17 }
 0x294   :  { %v1312_v37 = vpack.i.b16 %v1308_v34, %v1308_v34  ;;  %v1326_v49 = vpack.i.b16 %v1310_v45, %v1310_v45  ;;  %v153_v30 = vpack.c.bf16 %v146_v28, %v146_v28  ;;  %v154_v31 = vpack.c.bf16 %v150_v29, %v150_v29 }
 0x295   :  { %v1290_v39 = vrot.slane %v1283_v35, %v1242_v17  ;;  %v1324_v41 = vrot.slane %v1319_v36, %v2673_v60 }
 0x296   :  { %v1317_v42 = vrot.slane %v1312_v37, %v2673_v60  ;;  %v1755_v32 = vpack.i.b16 %v153_v30, %v153_v30  ;;  %v1762_v59 = vpack.i.b16 %v154_v31, %v154_v31 }
 0x297   :  { %v1298_v43 = vcombine.low %v1290_v39, %v1297_v40  ;;  %v1333_v44 = vmul.bf16 %v1324_v41, %v2716_v10  ;;  %v1331_v10 = vrot.slane %v1326_v49, %v2673_v60 }
 0x298   :  { %v1332_v27 = vmul.bf16 %v1317_v42, %v2714_v9  ;;  %v1760_v35 = vrot.slane %v1755_v32, %v2673_v60  ;;  %v1767_v37 = vrot.slane %v1762_v59, %v2673_v60 }
 0x299   :  { %v1305_v47 = vrot.slane %v1298_v43, %v1242_v17  ;;  %v1334_v63 = vmul.bf16 %v1331_v10, %v2706_v24  ;;  %v2405_v24 = vld [vmem:[#allocation7 + $0x130] ss:$8 sps:$4 sm:$0xff]   ;;  %v2419_v17 = vld [vmem:[#allocation7 + $0x174] ss:$8 sps:$4 sm:$0xff]  }
 0x29b   :  { %v1307_v48 = vsub.f32 %v140_v46, %v1305_v47  ;;  %v2108_v47 = vld [vmem:[%s2771_s5 + $0xf] ss:$0 sm:$0xff] }
 0x29d   :  { %v1343_v50 = vrot.slane %v1307_v48, %v2679_v62  ;;  %v1339_v51 = vrot.slane %v1307_v48, %v2673_v60  ;;  %v1347_v52 = vrot.slane %v1307_v48, %v2694_v38 }
 0x29f   :  { %v1352_v53 = vpack.c.bf16 %v1343_v50, %v1343_v50  ;;  %v1351_v54 = vpack.c.bf16 %v1339_v51, %v1339_v51  ;;  %v1353_v55 = vpack.c.bf16 %v1347_v52, %v1347_v52 }
 0x2a1   :  { %v1362_v56 = vpack.i.b16 %v1352_v53, %v1352_v53  ;;  %v1355_v57 = vpack.i.b16 %v1351_v54, %v1351_v54  ;;  %v1369_v58 = vpack.i.b16 %v1353_v55, %v1353_v55 }
 0x2a3   :  { %v1367_v61 = vrot.slane %v1362_v56, %v2673_v60  ;;  %v1360_v9 = vrot.slane %v1355_v57, %v2673_v60  ;;  %v1374_v1 = vrot.slane %v1369_v58, %v2673_v60 }
 0x2a5   :  { %v1376_v2 = vadd.bf16 %v1367_v61, %v1333_v44  ;;  %v1375_v4 = vadd.bf16 %v1360_v9, %v1332_v27  ;;  %v1377_v38 = vadd.bf16 %v1374_v1, %v1334_v63 }
 0x2a7   :  { %1698 = vmatprep.mubr.bf16.mxu1 %v1376_v2 }
 0x2a8   :  { %1699 = vmatmul.mubr.bf16.vlgmr.msra.gmra.mrb[12].mxu1 %v1375_v4 }
 0x2a9   :  { %1710 = vmatpush1.bf16.msra.mxu1 %v2396_v3  ;;  %1741 = vmatprep.mubr.bf16.mxu1 %v2571_v0  ;;  %v2414_v0 = vld [vmem:[#allocation7 + $0x160] ss:$8 sps:$4 sm:$0xff]  }
 0x2aa   :  { %1711 = vmatprep.subr.bf16.mxu1 %v2401_v5 }
 0x2ad   :  { %1712 = vmatpush1.bf16.msra.mxu1 %v2399_v6 }
 0x2ae   :  { %1713 = vmatprep.subr.bf16.mxu1 %v2404_v7 }
 0x2b1   :  { %1714 = vmatpush1.bf16.msra.mxu1 %v2402_v8 }
 0x2b2   :  { %1715 = vmatprep.subr.bf16.mxu1 %v2407_v11 }
 0x2b5   :  { %1716 = vmatpush1.bf16.msra.mxu1 %v2405_v24 }
 0x2b6   :  { %1717 = vmatprep.subr.bf16.mxu1 %v2410_v12 }
 0x2b9   :  { %1718 = vmatpush1.bf16.msra.mxu1 %v2408_v13 }
 0x2ba   :  { %1719 = vmatprep.subr.bf16.mxu1 %v2413_v14 }
 0x2bd   :  { %1720 = vmatpush1.bf16.msra.mxu1 %v2411_v15 }
 0x2be   :  { %1721 = vmatprep.subr.bf16.mxu1 %v2416_v16 }
 0x2c1   :  { %1722 = vmatpush1.bf16.msra.mxu1 %v2414_v0 }
 0x2c2   :  { %1723 = vmatprep.subr.bf16.mxu1 %v2419_v17 }
 0x2c5   :  { %1724 = vmatpush1.bf16.msra.mxu1 %v2417_v18 }
 0x2c8   :  { %1742 = vmatmul.mubr.bf16.vlgmr.msra.gmra.mrb[12].mxu1 %v1377_v38 }
 0x39b   :  { %v1743_v33 = vpop.f32.mrb[12].mxu1 }
 0x39c   :  { %v1745_v34 = vpop.f32.mrb[13].mxu1 }
 0x39d   :  { %v1747_v36 = vpop.f32.mrb[14].mxu1 }
 0x39e   :  { %v1752_v39 = vpack.c.bf16 %v1747_v36, %v1743_v33  ;;  %v1749_v40 = vpop.f32.mrb[15].mxu1 }
 0x39f   :  { %v1753_v41 = vpack.c.bf16 %v1749_v40, %v1745_v34 }
 0x3a0   :  { %v1768_v42 = vadd.bf16 %v1760_v35, %v1752_v39 }
 0x3a1   :  { %v1769_v43 = vadd.bf16 %v1767_v37, %v1753_v41 }
 0x3a2   :  { %v1770_v44 = vmul.bf16 1009007652, %v1768_v42 }
 0x3a3   :  { %v1771_v45 = vmul.bf16 1009007652, %v1769_v43 }
 0x3a4   :  { %v1772_v62 = vmax.bf16 %v1770_v44, %v1768_v42 }
 0x3a5   :  { %v1773_v46 = vmax.bf16 %v1771_v45, %v1769_v43 }
 0x3a7   :  { %1940 = vmatprep.mubr.bf16.mxu0 %v1773_v46 }
 0x3a8   :  { %1941 = vmatmul.mubr.bf16.vlgmr.msra.gmra.mrb[8].mxu0 %v1772_v62 }
 0x47b   :  { %v2185_v27 = vpop.f32.mrb[8].mxu0 }
 0x47c   :  { %v2186_v48 = vpop.f32.mrb[9].mxu0 }
 0x47d   :  { %v2187_v49 = vadd.f32 %v2186_v48, %v2185_v27  ;;  %v2188_v50 = vpop.f32.mrb[10].mxu0 }
 0x47e   :  { %v2189_v60 = vpop.f32.mrb[11].mxu0 }
 0x47f   :  { %v1943_v51 = vadd.f32 %v2187_v49, %v2108_v47  ;;  %v2190_v52 = vadd.f32 %v2189_v60, %v2188_v50 }
 0x481   :  { %1949 = vst [vmem:[%s2772_s6] sm:$0xff] %v1943_v51  ;;  %v1946_v53 = vadd.f32 %v2190_v52, %v2108_v47 }
 0x483   :  { %1950 = vst [vmem:[%s2772_s6 + $0x8] sm:$0xff] %v1946_v53 }
 0x484   :  { %1955 = vsyncpa [#allocation3], 1 }
 0x485   :  { %1956 = vsyncpa [#allocation5], 1 }
 0x486   :  { %1957 = vsyncpa [#allocation8], 1 }

</bundles_post_ra>
